<compile_context>
chip_gen: v7x
topology: tpu7x:2x2x1
jax: 0.10.0
libtpu: 0.0.40
codegen_flags: <defaults>
</compile_context>

<pallas_src>
import functools

import jax
import jax.numpy as jnp
from jax.experimental import pallas as pl
from jax.experimental.pallas import tpu as pltpu

LEAKY_SLOPE = 0.1


def _leaky(v):
    return jnp.where(v >= 0, v, LEAKY_SLOPE * v)


# ----------------------------------------------------------------------------
# Fused kernel: whole UNetUpBlock forward for one batch element.
# Feature maps are 2-D "CW" matrices: [row = y, col = channel*width + x].
# ----------------------------------------------------------------------------
def fused_up_block_kernel(x_ref, crop_ref, m_ref, p_ref, s_ref,
                          g1u_ref, g1c_ref, g2_ref, bias_ref, o_ref):
    dot = functools.partial(jnp.dot, preferred_element_type=jnp.float32)

    x = x_ref[0]        # (H, Cin*W)       input in CW layout
    crop = crop_ref[0]  # (Ho, Cbr*Wo)     center-cropped bridge in CW layout

    # --- ConvTranspose2d(k=2, s=2): parity-separated rows, then interleave ---
    u0 = dot(x, m_ref[0])                       # rows 2h   of up, (H, Cout*Wo)
    u1 = dot(x, m_ref[1])                       # rows 2h+1 of up
    up = dot(p_ref[0], u0) + dot(p_ref[1], u1) + bias_ref[0]   # (Ho, Cout*Wo)

    s_dn = s_ref[0]     # row y reads row y-1 (zero row at top)    -> dy = 0 tap
    s_up = s_ref[1]     # row y reads row y+1 (zero row at bottom) -> dy = 2 tap

    # --- Conv2d(3x3, pad=1) #1 on cat([up, crop], channel) + LeakyReLU ---
    # Channel concat is realized by splitting the conv weights into the
    # `up`-channel band matrices (g1u) and bridge-channel band matrices (g1c).
    up_m, up_p = dot(s_dn, up), dot(s_up, up)
    cr_m, cr_p = dot(s_dn, crop), dot(s_up, crop)
    h1 = (dot(up_m, g1u_ref[0]) + dot(up, g1u_ref[1]) + dot(up_p, g1u_ref[2])
          + dot(cr_m, g1c_ref[0]) + dot(crop, g1c_ref[1]) + dot(cr_p, g1c_ref[2])
          + bias_ref[1])
    h1 = _leaky(h1)

    # --- Conv2d(3x3, pad=1) #2 + LeakyReLU ---
    h1_m, h1_p = dot(s_dn, h1), dot(s_up, h1)
    h2 = (dot(h1_m, g2_ref[0]) + dot(h1, g2_ref[1]) + dot(h1_p, g2_ref[2])
          + bias_ref[2])
    h2 = _leaky(h2)

    o_ref[...] = h2.reshape(o_ref.shape)        # (1, Ho, Cout*Wo) dense store


# ----------------------------------------------------------------------------
# Wrapper-side weight packing: fold all structure into constant matrices.
# ----------------------------------------------------------------------------
def _pack_params(params, H, W):
    f32 = jnp.float32
    wt = params["wt"].astype(f32)   # (Cin, Cout, 2, 2)  ConvTranspose2d weight
    bt = params["bt"].astype(f32)   # (Cout,)
    w1 = params["w1"].astype(f32)   # (Cout, Ccat, 3, 3)
    b1 = params["b1"].astype(f32)   # (Cout,)
    w2 = params["w2"].astype(f32)   # (Cout, Cout, 3, 3)
    b2 = params["b2"].astype(f32)   # (Cout,)

    Cin, Cout = wt.shape[0], wt.shape[1]
    Ho, Wo = 2 * H, 2 * W

    # Upconv matrices: M[a][ci*W + w, c*Wo + (2w+b)] = wt[ci, c, a, b]
    emb = jnp.zeros((2, W, Wo), f32)
    for b in range(2):
        emb = emb.at[b, jnp.arange(W), 2 * jnp.arange(W) + b].set(1.0)
    M = jnp.einsum("icab,bwx->aiwcx", wt, emb).reshape(2, Cin * W, Cout * Wo)

    # Row-interleave matrices: P[a][2h + a, h] = 1
    P = jnp.zeros((2, Ho, H), f32)
    for a in range(2):
        P = P.at[a, 2 * jnp.arange(H) + a, jnp.arange(H)].set(1.0)

    # Vertical 3x3 taps: shift-by-one row matrices (implicit zero-pad rows).
    S = jnp.stack([jnp.eye(Ho, k=-1, dtype=f32),   # row y <- row y-1
                   jnp.eye(Ho, k=+1, dtype=f32)])  # row y <- row y+1

    # Horizontal 3x3 taps: banded matrices (implicit zero-pad columns).
    # band[dx][u, x] = 1  iff  u == x - 1 + dx
    band = jnp.stack([jnp.eye(Wo, k=1 - dx, dtype=f32) for dx in range(3)])

    def make_g(w):   # w: (Cout, Cg, 3, 3) -> (3, Cg*Wo, Cout*Wo)
        Cg = w.shape[1]
        g = jnp.einsum("oidk,kuv->diuov", w, band)
        return g.reshape(3, Cg * Wo, Cout * Wo)

    G1u = make_g(w1[:, :Cout])    # conv1 taps on the `up` half of the concat
    G1c = make_g(w1[:, Cout:])    # conv1 taps on the cropped-bridge half
    G2 = make_g(w2)               # conv2 taps

    bias = jnp.stack([jnp.repeat(bt, Wo),
                      jnp.repeat(b1, Wo),
                      jnp.repeat(b2, Wo)])[:, None, :]   # (3, 1, Cout*Wo)

    return dict(M=M, P=P, S=S, G1u=G1u, G1c=G1c, G2=G2, bias=bias)


# ----------------------------------------------------------------------------
# Forward wrapper (NCHW in / NCHW out).
# ----------------------------------------------------------------------------
@jax.jit
def unet_up_block_forward(x_nchw, bridge_nchw, params):
    N, Cin, H, W = x_nchw.shape
    Cout = params["wt"].shape[1]
    Cbr = params["w1"].shape[1] - Cout
    Ho, Wo = 2 * H, 2 * W
    CWo = Cout * Wo

    p = _pack_params(params, H, W)

    # CW layout: [n, y, channel*width + x]
    x_cw = jnp.transpose(x_nchw, (0, 2, 1, 3)).reshape(N, H, Cin * W)

    dy0 = (bridge_nchw.shape[2] - Ho) // 2
    dx0 = (bridge_nchw.shape[3] - Wo) // 2
    crop = bridge_nchw[:, :, dy0:dy0 + Ho, dx0:dx0 + Wo]
    crop_cw = jnp.transpose(crop, (0, 2, 1, 3)).reshape(N, Ho, Cbr * Wo)

    def const_spec(shape):
        return pl.BlockSpec(shape, lambda n: (0,) * len(shape))

    out_cw = pl.pallas_call(
        fused_up_block_kernel,
        out_shape=jax.ShapeDtypeStruct((N, Ho, CWo), jnp.float32),
        grid=(N,),
        in_specs=[
            pl.BlockSpec((1, H, Cin * W), lambda n: (n, 0, 0)),
            pl.BlockSpec((1, Ho, Cbr * Wo), lambda n: (n, 0, 0)),
            const_spec((2, Cin * W, CWo)),
            const_spec((2, Ho, H)),
            const_spec((2, Ho, Ho)),
            const_spec((3, CWo, CWo)),
            const_spec((3, Cbr * Wo, CWo)),
            const_spec((3, CWo, CWo)),
            const_spec((3, 1, CWo)),
        ],
        out_specs=pl.BlockSpec((1, Ho, CWo), lambda n: (n, 0, 0)),
        compiler_params=pltpu.CompilerParams(
            dimension_semantics=("parallel",)),
    )(x_cw, crop_cw, p["M"], p["P"], p["S"], p["G1u"], p["G1c"], p["G2"],
      p["bias"])

    # decode CW layout back to NCHW
    return out_cw.reshape(N, Ho, Cout, Wo).transpose(0, 2, 1, 3)


# ----------------------------------------------------------------------------
# Pure-JAX reference (mirrors the PyTorch module) for a correctness check.
# ----------------------------------------------------------------------------
def reference_forward(x, bridge, params):
    wt, bt = params["wt"], params["bt"]
    w1, b1 = params["w1"], params["b1"]
    w2, b2 = params["w2"], params["b2"]
    N, Cin, H, W = x.shape
    Cout = wt.shape[1]

    y = jnp.einsum("nihw,iokl->nohkwl", x, wt)           # (N,Co,H,2,W,2)
    up = y.reshape(N, Cout, 2 * H, 2 * W) + bt[None, :, None, None]

    Ho, Wo = up.shape[2], up.shape[3]
    dy0 = (bridge.shape[2] - Ho) // 2
    dx0 = (bridge.shape[3] - Wo) // 2
    crop = bridge[:, :, dy0:dy0 + Ho, dx0:dx0 + Wo]
    cat = jnp.concatenate([up, crop], axis=1)

    def conv3x3(inp, w, b):
        xp = jnp.pad(inp, ((0, 0), (0, 0), (1, 1), (1, 1)))
        Hh, Ww = inp.shape[2], inp.shape[3]
        out = jnp.broadcast_to(b[None, :, None, None],
                               (inp.shape[0], w.shape[0], Hh, Ww))
        for dy in range(3):
            for dx in range(3):
                out = out + jnp.einsum(
                    "nchw,oc->nohw",
                    xp[:, :, dy:dy + Hh, dx:dx + Ww], w[:, :, dy, dx])
        return out

    def leaky(v):
        return jnp.where(v >= 0, v, LEAKY_SLOPE * v)

    h1 = leaky(conv3x3(cat, w1, b1))
    return leaky(conv3x3(h1, w2, b2))


if __name__ == "__main__":
    key = jax.random.PRNGKey(0)
    ks = jax.random.split(key, 8)

    # Module config: in_size=8, out_size=4, up_mode='upconv'
    N, in_size, out_size = 2, 8, 4
    H = W = 8                      # x spatial
    BH = BW = 18                   # bridge spatial (tests center_crop offset=1)

    x = jax.random.normal(ks[0], (N, in_size, H, W), jnp.float32)
    bridge = jax.random.normal(ks[1], (N, out_size, BH, BW), jnp.float32)

    params = {
        "wt": 0.1 * jax.random.normal(ks[2], (in_size, out_size, 2, 2), jnp.float32),
        "bt": 0.1 * jax.random.normal(ks[3], (out_size,), jnp.float32),
        "w1": 0.1 * jax.random.normal(ks[4], (out_size, in_size, 3, 3), jnp.float32),
        "b1": 0.1 * jax.random.normal(ks[5], (out_size,), jnp.float32),
        "w2": 0.1 * jax.random.normal(ks[6], (out_size, out_size, 3, 3), jnp.float32),
        "b2": 0.1 * jax.random.normal(ks[7], (out_size,), jnp.float32),
    }

    out = jax.block_until_ready(unet_up_block_forward(x, bridge, params))
    ref = jax.block_until_ready(reference_forward(x, bridge, params))

    assert out.shape == (N, out_size, 2 * H, 2 * W), out.shape
    assert jnp.allclose(out, ref, atol=1e-4, rtol=1e-4), \
        float(jnp.max(jnp.abs(out - ref)))

    # TODO(synk): batch_norm / dropout branches of UNetConvBlock are disabled in
    # this config (batch_norm=False, dropout=0), matching one valid instantiation.
    print("KERNEL_OK")
</pallas_src>

<mosaic_0001>
module attributes {stable_mosaic.version = 11 : i64} {
  func.func @fused_up_block_kernel(%arg0: i32, %arg1: memref<1x8x64xf32, #tpu.memory_space<vmem>>, %arg2: memref<1x16x64xf32, #tpu.memory_space<vmem>>, %arg3: memref<2x64x64xf32, #tpu.memory_space<vmem>>, %arg4: memref<2x16x8xf32, #tpu.memory_space<vmem>>, %arg5: memref<2x16x16xf32, #tpu.memory_space<vmem>>, %arg6: memref<3x64x64xf32, #tpu.memory_space<vmem>>, %arg7: memref<3x64x64xf32, #tpu.memory_space<vmem>>, %arg8: memref<3x64x64xf32, #tpu.memory_space<vmem>>, %arg9: memref<3x1x64xf32, #tpu.memory_space<vmem>>, %arg10: memref<1x16x64xf32, #tpu.memory_space<vmem>>) attributes {dimension_semantics = [#tpu.dimension_semantics<parallel>], iteration_bounds = array<i64: 2>, scalar_prefetch = 0 : i64, scratch_operands = 0 : i64, tpu.core_type = #tpu.core_type<tc>, window_params = [{transform_indices = @transform_0, window_bounds = array<i64: 1, 8, 64>}, {transform_indices = @transform_1, window_bounds = array<i64: 1, 16, 64>}, {pipeline_mode = #tpu.pipeline_mode<synchronous>, transform_indices = @transform_2, window_bounds = array<i64: 2, 64, 64>}, {pipeline_mode = #tpu.pipeline_mode<synchronous>, transform_indices = @transform_3, window_bounds = array<i64: 2, 16, 8>}, {pipeline_mode = #tpu.pipeline_mode<synchronous>, transform_indices = @transform_4, window_bounds = array<i64: 2, 16, 16>}, {pipeline_mode = #tpu.pipeline_mode<synchronous>, transform_indices = @transform_5, window_bounds = array<i64: 3, 64, 64>}, {pipeline_mode = #tpu.pipeline_mode<synchronous>, transform_indices = @transform_6, window_bounds = array<i64: 3, 64, 64>}, {pipeline_mode = #tpu.pipeline_mode<synchronous>, transform_indices = @transform_7, window_bounds = array<i64: 3, 64, 64>}, {pipeline_mode = #tpu.pipeline_mode<synchronous>, transform_indices = @transform_8, window_bounds = array<i64: 3, 1, 64>}, {transform_indices = @transform_9, window_bounds = array<i64: 1, 16, 64>}]} {
    %c0 = arith.constant 0 : index
    %c0_0 = arith.constant 0 : index
    %c0_1 = arith.constant 0 : index
    %0 = vector.load %arg1[%c0, %c0_0, %c0_1] : memref<1x8x64xf32, #tpu.memory_space<vmem>>, vector<1x8x64xf32>
    %1 = vector.shape_cast %0 : vector<1x8x64xf32> to vector<8x64xf32>
    %c0_2 = arith.constant 0 : index
    %c0_3 = arith.constant 0 : index
    %c0_4 = arith.constant 0 : index
    %2 = vector.load %arg2[%c0_2, %c0_3, %c0_4] : memref<1x16x64xf32, #tpu.memory_space<vmem>>, vector<1x16x64xf32>
    %3 = vector.shape_cast %2 : vector<1x16x64xf32> to vector<16x64xf32>
    %c0_5 = arith.constant 0 : index
    %c0_6 = arith.constant 0 : index
    %c0_7 = arith.constant 0 : index
    %4 = vector.load %arg3[%c0_5, %c0_6, %c0_7] : memref<2x64x64xf32, #tpu.memory_space<vmem>>, vector<1x64x64xf32>
    %5 = vector.shape_cast %4 : vector<1x64x64xf32> to vector<64x64xf32>
    %cst = arith.constant dense<0.000000e+00> : vector<8x64xf32>
    %6 = tpu.matmul %1, %5, %cst {dimension_numbers = #tpu.dot_dimension_numbers<[1], [0], [0], [1], [0, 0, 1, 1], [], []>} : vector<8x64xf32>, vector<64x64xf32>, vector<8x64xf32> -> vector<8x64xf32>
    %c1 = arith.constant 1 : index
    %c0_8 = arith.constant 0 : index
    %c0_9 = arith.constant 0 : index
    %7 = vector.load %arg3[%c1, %c0_8, %c0_9] : memref<2x64x64xf32, #tpu.memory_space<vmem>>, vector<1x64x64xf32>
    %8 = vector.shape_cast %7 : vector<1x64x64xf32> to vector<64x64xf32>
    %cst_10 = arith.constant dense<0.000000e+00> : vector<8x64xf32>
    %9 = tpu.matmul %1, %8, %cst_10 {dimension_numbers = #tpu.dot_dimension_numbers<[1], [0], [0], [1], [0, 0, 1, 1], [], []>} : vector<8x64xf32>, vector<64x64xf32>, vector<8x64xf32> -> vector<8x64xf32>
    %c0_11 = arith.constant 0 : index
    %c0_12 = arith.constant 0 : index
    %c0_13 = arith.constant 0 : index
    %10 = vector.load %arg4[%c0_11, %c0_12, %c0_13] : memref<2x16x8xf32, #tpu.memory_space<vmem>>, vector<1x16x8xf32>
    %11 = vector.shape_cast %10 : vector<1x16x8xf32> to vector<16x8xf32>
    %cst_14 = arith.constant dense<0.000000e+00> : vector<16x64xf32>
    %12 = tpu.matmul %11, %6, %cst_14 {dimension_numbers = #tpu.dot_dimension_numbers<[1], [0], [0], [1], [0, 0, 1, 1], [], []>} : vector<16x8xf32>, vector<8x64xf32>, vector<16x64xf32> -> vector<16x64xf32>
    %c1_15 = arith.constant 1 : index
    %c0_16 = arith.constant 0 : index
    %c0_17 = arith.constant 0 : index
    %13 = vector.load %arg4[%c1_15, %c0_16, %c0_17] : memref<2x16x8xf32, #tpu.memory_space<vmem>>, vector<1x16x8xf32>
    %14 = vector.shape_cast %13 : vector<1x16x8xf32> to vector<16x8xf32>
    %cst_18 = arith.constant dense<0.000000e+00> : vector<16x64xf32>
    %15 = tpu.matmul %14, %9, %cst_18 {dimension_numbers = #tpu.dot_dimension_numbers<[1], [0], [0], [1], [0, 0, 1, 1], [], []>} : vector<16x8xf32>, vector<8x64xf32>, vector<16x64xf32> -> vector<16x64xf32>
    %16 = arith.addf %12, %15 : vector<16x64xf32>
    %c0_19 = arith.constant 0 : index
    %c0_20 = arith.constant 0 : index
    %c0_21 = arith.constant 0 : index
    %17 = vector.load %arg9[%c0_19, %c0_20, %c0_21] : memref<3x1x64xf32, #tpu.memory_space<vmem>>, vector<1x1x64xf32>
    %18 = vector.shape_cast %17 : vector<1x1x64xf32> to vector<1x64xf32>
    %19 = vector.broadcast %18 : vector<1x64xf32> to vector<16x64xf32>
    %20 = arith.addf %16, %19 : vector<16x64xf32>
    %c0_22 = arith.constant 0 : index
    %c0_23 = arith.constant 0 : index
    %c0_24 = arith.constant 0 : index
    %21 = vector.load %arg5[%c0_22, %c0_23, %c0_24] : memref<2x16x16xf32, #tpu.memory_space<vmem>>, vector<1x16x16xf32>
    %22 = vector.shape_cast %21 : vector<1x16x16xf32> to vector<16x16xf32>
    %c1_25 = arith.constant 1 : index
    %c0_26 = arith.constant 0 : index
    %c0_27 = arith.constant 0 : index
    %23 = vector.load %arg5[%c1_25, %c0_26, %c0_27] : memref<2x16x16xf32, #tpu.memory_space<vmem>>, vector<1x16x16xf32>
    %24 = vector.shape_cast %23 : vector<1x16x16xf32> to vector<16x16xf32>
    %cst_28 = arith.constant dense<0.000000e+00> : vector<16x64xf32>
    %25 = tpu.matmul %22, %20, %cst_28 {dimension_numbers = #tpu.dot_dimension_numbers<[1], [0], [0], [1], [0, 0, 1, 1], [], []>} : vector<16x16xf32>, vector<16x64xf32>, vector<16x64xf32> -> vector<16x64xf32>
    %cst_29 = arith.constant dense<0.000000e+00> : vector<16x64xf32>
    %26 = tpu.matmul %24, %20, %cst_29 {dimension_numbers = #tpu.dot_dimension_numbers<[1], [0], [0], [1], [0, 0, 1, 1], [], []>} : vector<16x16xf32>, vector<16x64xf32>, vector<16x64xf32> -> vector<16x64xf32>
    %cst_30 = arith.constant dense<0.000000e+00> : vector<16x64xf32>
    %27 = tpu.matmul %22, %3, %cst_30 {dimension_numbers = #tpu.dot_dimension_numbers<[1], [0], [0], [1], [0, 0, 1, 1], [], []>} : vector<16x16xf32>, vector<16x64xf32>, vector<16x64xf32> -> vector<16x64xf32>
    %cst_31 = arith.constant dense<0.000000e+00> : vector<16x64xf32>
    %28 = tpu.matmul %24, %3, %cst_31 {dimension_numbers = #tpu.dot_dimension_numbers<[1], [0], [0], [1], [0, 0, 1, 1], [], []>} : vector<16x16xf32>, vector<16x64xf32>, vector<16x64xf32> -> vector<16x64xf32>
    %c0_32 = arith.constant 0 : index
    %c0_33 = arith.constant 0 : index
    %c0_34 = arith.constant 0 : index
    %29 = vector.load %arg6[%c0_32, %c0_33, %c0_34] : memref<3x64x64xf32, #tpu.memory_space<vmem>>, vector<1x64x64xf32>
    %30 = vector.shape_cast %29 : vector<1x64x64xf32> to vector<64x64xf32>
    %cst_35 = arith.constant dense<0.000000e+00> : vector<16x64xf32>
    %31 = tpu.matmul %25, %30, %cst_35 {dimension_numbers = #tpu.dot_dimension_numbers<[1], [0], [0], [1], [0, 0, 1, 1], [], []>} : vector<16x64xf32>, vector<64x64xf32>, vector<16x64xf32> -> vector<16x64xf32>
    %c1_36 = arith.constant 1 : index
    %c0_37 = arith.constant 0 : index
    %c0_38 = arith.constant 0 : index
    %32 = vector.load %arg6[%c1_36, %c0_37, %c0_38] : memref<3x64x64xf32, #tpu.memory_space<vmem>>, vector<1x64x64xf32>
    %33 = vector.shape_cast %32 : vector<1x64x64xf32> to vector<64x64xf32>
    %cst_39 = arith.constant dense<0.000000e+00> : vector<16x64xf32>
    %34 = tpu.matmul %20, %33, %cst_39 {dimension_numbers = #tpu.dot_dimension_numbers<[1], [0], [0], [1], [0, 0, 1, 1], [], []>} : vector<16x64xf32>, vector<64x64xf32>, vector<16x64xf32> -> vector<16x64xf32>
    %35 = arith.addf %31, %34 : vector<16x64xf32>
    %c2 = arith.constant 2 : index
    %c0_40 = arith.constant 0 : index
    %c0_41 = arith.constant 0 : index
    %36 = vector.load %arg6[%c2, %c0_40, %c0_41] : memref<3x64x64xf32, #tpu.memory_space<vmem>>, vector<1x64x64xf32>
    %37 = vector.shape_cast %36 : vector<1x64x64xf32> to vector<64x64xf32>
    %cst_42 = arith.constant dense<0.000000e+00> : vector<16x64xf32>
    %38 = tpu.matmul %26, %37, %cst_42 {dimension_numbers = #tpu.dot_dimension_numbers<[1], [0], [0], [1], [0, 0, 1, 1], [], []>} : vector<16x64xf32>, vector<64x64xf32>, vector<16x64xf32> -> vector<16x64xf32>
    %39 = arith.addf %35, %38 : vector<16x64xf32>
    %c0_43 = arith.constant 0 : index
    %c0_44 = arith.constant 0 : index
    %c0_45 = arith.constant 0 : index
    %40 = vector.load %arg7[%c0_43, %c0_44, %c0_45] : memref<3x64x64xf32, #tpu.memory_space<vmem>>, vector<1x64x64xf32>
    %41 = vector.shape_cast %40 : vector<1x64x64xf32> to vector<64x64xf32>
    %cst_46 = arith.constant dense<0.000000e+00> : vector<16x64xf32>
    %42 = tpu.matmul %27, %41, %cst_46 {dimension_numbers = #tpu.dot_dimension_numbers<[1], [0], [0], [1], [0, 0, 1, 1], [], []>} : vector<16x64xf32>, vector<64x64xf32>, vector<16x64xf32> -> vector<16x64xf32>
    %43 = arith.addf %39, %42 : vector<16x64xf32>
    %c1_47 = arith.constant 1 : index
    %c0_48 = arith.constant 0 : index
    %c0_49 = arith.constant 0 : index
    %44 = vector.load %arg7[%c1_47, %c0_48, %c0_49] : memref<3x64x64xf32, #tpu.memory_space<vmem>>, vector<1x64x64xf32>
    %45 = vector.shape_cast %44 : vector<1x64x64xf32> to vector<64x64xf32>
    %cst_50 = arith.constant dense<0.000000e+00> : vector<16x64xf32>
    %46 = tpu.matmul %3, %45, %cst_50 {dimension_numbers = #tpu.dot_dimension_numbers<[1], [0], [0], [1], [0, 0, 1, 1], [], []>} : vector<16x64xf32>, vector<64x64xf32>, vector<16x64xf32> -> vector<16x64xf32>
    %47 = arith.addf %43, %46 : vector<16x64xf32>
    %c2_51 = arith.constant 2 : index
    %c0_52 = arith.constant 0 : index
    %c0_53 = arith.constant 0 : index
    %48 = vector.load %arg7[%c2_51, %c0_52, %c0_53] : memref<3x64x64xf32, #tpu.memory_space<vmem>>, vector<1x64x64xf32>
    %49 = vector.shape_cast %48 : vector<1x64x64xf32> to vector<64x64xf32>
    %cst_54 = arith.constant dense<0.000000e+00> : vector<16x64xf32>
    %50 = tpu.matmul %28, %49, %cst_54 {dimension_numbers = #tpu.dot_dimension_numbers<[1], [0], [0], [1], [0, 0, 1, 1], [], []>} : vector<16x64xf32>, vector<64x64xf32>, vector<16x64xf32> -> vector<16x64xf32>
    %51 = arith.addf %47, %50 : vector<16x64xf32>
    %c1_55 = arith.constant 1 : index
    %c0_56 = arith.constant 0 : index
    %c0_57 = arith.constant 0 : index
    %52 = vector.load %arg9[%c1_55, %c0_56, %c0_57] : memref<3x1x64xf32, #tpu.memory_space<vmem>>, vector<1x1x64xf32>
    %53 = vector.shape_cast %52 : vector<1x1x64xf32> to vector<1x64xf32>
    %54 = vector.broadcast %53 : vector<1x64xf32> to vector<16x64xf32>
    %55 = arith.addf %51, %54 : vector<16x64xf32>
    %cst_58 = arith.constant 0.000000e+00 : f32
    %56 = vector.broadcast %cst_58 : f32 to vector<16x64xf32>
    %57 = arith.cmpf oge, %55, %56 : vector<16x64xf32>
    %cst_59 = arith.constant 1.000000e-01 : f32
    %58 = vector.broadcast %cst_59 : f32 to vector<16x64xf32>
    %59 = arith.mulf %58, %55 : vector<16x64xf32>
    %60 = arith.select %57, %55, %59 : vector<16x64xi1>, vector<16x64xf32>
    %cst_60 = arith.constant dense<0.000000e+00> : vector<16x64xf32>
    %61 = tpu.matmul %22, %60, %cst_60 {dimension_numbers = #tpu.dot_dimension_numbers<[1], [0], [0], [1], [0, 0, 1, 1], [], []>} : vector<16x16xf32>, vector<16x64xf32>, vector<16x64xf32> -> vector<16x64xf32>
    %cst_61 = arith.constant dense<0.000000e+00> : vector<16x64xf32>
    %62 = tpu.matmul %24, %60, %cst_61 {dimension_numbers = #tpu.dot_dimension_numbers<[1], [0], [0], [1], [0, 0, 1, 1], [], []>} : vector<16x16xf32>, vector<16x64xf32>, vector<16x64xf32> -> vector<16x64xf32>
    %c0_62 = arith.constant 0 : index
    %c0_63 = arith.constant 0 : index
    %c0_64 = arith.constant 0 : index
    %63 = vector.load %arg8[%c0_62, %c0_63, %c0_64] : memref<3x64x64xf32, #tpu.memory_space<vmem>>, vector<1x64x64xf32>
    %64 = vector.shape_cast %63 : vector<1x64x64xf32> to vector<64x64xf32>
    %cst_65 = arith.constant dense<0.000000e+00> : vector<16x64xf32>
    %65 = tpu.matmul %61, %64, %cst_65 {dimension_numbers = #tpu.dot_dimension_numbers<[1], [0], [0], [1], [0, 0, 1, 1], [], []>} : vector<16x64xf32>, vector<64x64xf32>, vector<16x64xf32> -> vector<16x64xf32>
    %c1_66 = arith.constant 1 : index
    %c0_67 = arith.constant 0 : index
    %c0_68 = arith.constant 0 : index
    %66 = vector.load %arg8[%c1_66, %c0_67, %c0_68] : memref<3x64x64xf32, #tpu.memory_space<vmem>>, vector<1x64x64xf32>
    %67 = vector.shape_cast %66 : vector<1x64x64xf32> to vector<64x64xf32>
    %cst_69 = arith.constant dense<0.000000e+00> : vector<16x64xf32>
    %68 = tpu.matmul %60, %67, %cst_69 {dimension_numbers = #tpu.dot_dimension_numbers<[1], [0], [0], [1], [0, 0, 1, 1], [], []>} : vector<16x64xf32>, vector<64x64xf32>, vector<16x64xf32> -> vector<16x64xf32>
    %69 = arith.addf %65, %68 : vector<16x64xf32>
    %c2_70 = arith.constant 2 : index
    %c0_71 = arith.constant 0 : index
    %c0_72 = arith.constant 0 : index
    %70 = vector.load %arg8[%c2_70, %c0_71, %c0_72] : memref<3x64x64xf32, #tpu.memory_space<vmem>>, vector<1x64x64xf32>
    %71 = vector.shape_cast %70 : vector<1x64x64xf32> to vector<64x64xf32>
    %cst_73 = arith.constant dense<0.000000e+00> : vector<16x64xf32>
    %72 = tpu.matmul %62, %71, %cst_73 {dimension_numbers = #tpu.dot_dimension_numbers<[1], [0], [0], [1], [0, 0, 1, 1], [], []>} : vector<16x64xf32>, vector<64x64xf32>, vector<16x64xf32> -> vector<16x64xf32>
    %73 = arith.addf %69, %72 : vector<16x64xf32>
    %c2_74 = arith.constant 2 : index
    %c0_75 = arith.constant 0 : index
    %c0_76 = arith.constant 0 : index
    %74 = vector.load %arg9[%c2_74, %c0_75, %c0_76] : memref<3x1x64xf32, #tpu.memory_space<vmem>>, vector<1x1x64xf32>
    %75 = vector.shape_cast %74 : vector<1x1x64xf32> to vector<1x64xf32>
    %76 = vector.broadcast %75 : vector<1x64xf32> to vector<16x64xf32>
    %77 = arith.addf %73, %76 : vector<16x64xf32>
    %cst_77 = arith.constant 0.000000e+00 : f32
    %78 = vector.broadcast %cst_77 : f32 to vector<16x64xf32>
    %79 = arith.cmpf oge, %77, %78 : vector<16x64xf32>
    %cst_78 = arith.constant 1.000000e-01 : f32
    %80 = vector.broadcast %cst_78 : f32 to vector<16x64xf32>
    %81 = arith.mulf %80, %77 : vector<16x64xf32>
    %82 = arith.select %79, %77, %81 : vector<16x64xi1>, vector<16x64xf32>
    %83 = vector.shape_cast %82 : vector<16x64xf32> to vector<1x16x64xf32>
    %c0_79 = arith.constant 0 : index
    %c0_80 = arith.constant 0 : index
    %c0_81 = arith.constant 0 : index
    %84 = vector.load %arg10[%c0_79, %c0_80, %c0_81] : memref<1x16x64xf32, #tpu.memory_space<vmem>>, vector<1x16x64xf32>
    tpu.vector_store %arg10[%c0_79, %c0_80, %c0_81], %83 {strides = array<i32>} : memref<1x16x64xf32, #tpu.memory_space<vmem>>, vector<1x16x64xf32>,
    return
  }
  func.func @transform_0(%arg0: i32) -> (i32, i32, i32) {
    %c0_i32 = arith.constant 0 : i32
    %c0_i32_0 = arith.constant 0 : i32
    %c0_i32_1 = arith.constant 0 : i32
    return %arg0, %c0_i32, %c0_i32_0 : i32, i32, i32
  }
  func.func @transform_1(%arg0: i32) -> (i32, i32, i32) {
    %c0_i32 = arith.constant 0 : i32
    %c0_i32_0 = arith.constant 0 : i32
    %c0_i32_1 = arith.constant 0 : i32
    return %arg0, %c0_i32, %c0_i32_0 : i32, i32, i32
  }
  func.func @transform_2(%arg0: i32) -> (i32, i32, i32) {
    %c0_i32 = arith.constant 0 : i32
    %c0_i32_0 = arith.constant 0 : i32
    %c0_i32_1 = arith.constant 0 : i32
    %c0_i32_2 = arith.constant 0 : i32
    return %c0_i32, %c0_i32_0, %c0_i32_1 : i32, i32, i32
  }
  func.func @transform_3(%arg0: i32) -> (i32, i32, i32) {
    %c0_i32 = arith.constant 0 : i32
    %c0_i32_0 = arith.constant 0 : i32
    %c0_i32_1 = arith.constant 0 : i32
    %c0_i32_2 = arith.constant 0 : i32
    return %c0_i32, %c0_i32_0, %c0_i32_1 : i32, i32, i32
  }
  func.func @transform_4(%arg0: i32) -> (i32, i32, i32) {
    %c0_i32 = arith.constant 0 : i32
    %c0_i32_0 = arith.constant 0 : i32
    %c0_i32_1 = arith.constant 0 : i32
    %c0_i32_2 = arith.constant 0 : i32
    return %c0_i32, %c0_i32_0, %c0_i32_1 : i32, i32, i32
  }
  func.func @transform_5(%arg0: i32) -> (i32, i32, i32) {
    %c0_i32 = arith.constant 0 : i32
    %c0_i32_0 = arith.constant 0 : i32
    %c0_i32_1 = arith.constant 0 : i32
    %c0_i32_2 = arith.constant 0 : i32
    return %c0_i32, %c0_i32_0, %c0_i32_1 : i32, i32, i32
  }
  func.func @transform_6(%arg0: i32) -> (i32, i32, i32) {
    %c0_i32 = arith.constant 0 : i32
    %c0_i32_0 = arith.constant 0 : i32
    %c0_i32_1 = arith.constant 0 : i32
    %c0_i32_2 = arith.constant 0 : i32
    return %c0_i32, %c0_i32_0, %c0_i32_1 : i32, i32, i32
  }
  func.func @transform_7(%arg0: i32) -> (i32, i32, i32) {
    %c0_i32 = arith.constant 0 : i32
    %c0_i32_0 = arith.constant 0 : i32
    %c0_i32_1 = arith.constant 0 : i32
    %c0_i32_2 = arith.constant 0 : i32
    return %c0_i32, %c0_i32_0, %c0_i32_1 : i32, i32, i32
  }
  func.func @transform_8(%arg0: i32) -> (i32, i32, i32) {
    %c0_i32 = arith.constant 0 : i32
    %c0_i32_0 = arith.constant 0 : i32
    %c0_i32_1 = arith.constant 0 : i32
    %c0_i32_2 = arith.constant 0 : i32
    return %c0_i32, %c0_i32_0, %c0_i32_1 : i32, i32, i32
  }
  func.func @transform_9(%arg0: i32) -> (i32, i32, i32) {
    %c0_i32 = arith.constant 0 : i32
    %c0_i32_0 = arith.constant 0 : i32
    %c0_i32_1 = arith.constant 0 : i32
    return %arg0, %c0_i32, %c0_i32_0 : i32, i32, i32
  }
}

</mosaic_0001>

<bundles_post_ra>
// kernel: unet_up_block_forward.1
= control target key start
LH: loop header
LB: loop body
LE: loop exit
PB: predicated region body
PF: predicated region fallthrough
CT: control target
= control target key end

     0   :  { %s2871_s30 = smov 0   ;;  %s3273_s0 = inlined_call_operand.vmem [shape: f32[2,8,64], index: 0, kind: input, shape index: {}]   ;;  %s3274_s1 = inlined_call_operand.vmem [shape: f32[2,16,64], index: 1, kind: input, shape index: {}]   ;;  %s3275_s2 = inlined_call_operand.vmem [shape: f32[2,64,64], index: 2, kind: input, shape index: {}]   ;;  %s3276_s3 = inlined_call_operand.vmem [shape: f32[2,16,8], index: 3, kind: input, shape index: {}]   ;;  %s3277_s4 = inlined_call_operand.vmem [shape: f32[2,16,16], index: 4, kind: input, shape index: {}]   ;;  %s3278_s5 = inlined_call_operand.vmem [shape: f32[3,64,64], index: 5, kind: input, shape index: {}]   ;;  %s3279_s6 = inlined_call_operand.vmem [shape: f32[3,64,64], index: 6, kind: input, shape index: {}]   ;;  %s3280_s7 = inlined_call_operand.vmem [shape: f32[3,64,64], index: 7, kind: input, shape index: {}]   ;;  %s3281_s8 = inlined_call_operand.vmem [shape: f32[3,1,64], index: 8, kind: input, shape index: {}]   ;;  %s3282_s9 = inlined_call_operand.vmem [shape: f32[2,16,64], index: 9, kind: output, shape index: {}]  }
   0x1 LB: > { %s2077_s10 = sadd.s32 4294967295, %s2816_s30   ;;  %p2081_p0 = scmp.ge.s32.totalorder %s2816_s30, 1  ;;  %s2816_s30 = sphi %s2871_s30, %s19_s30  }
   0x2   : > { %p296_p1 = scmp.lt.s32.totalorder %s2816_s30, 3 }
   0x4   : > { %p297_p2 = pnand %p2081_p0, %p296_p1 }
   0x5   : > { %v353_v0 = vld [vmem:[%s3275_s2] sm:$0xff] (!%p297_p2)  ;;  %v354_v1 = vld [vmem:[%s3275_s2 + $0x8] sm:$0xff] (!%p297_p2)  ;;  %v355_v2 = vld [vmem:[%s3275_s2 + $0x10] sm:$0xff] (!%p297_p2)  ;;  %v2818_v3 = vmov (!%p297_p2), 0.0|0.0   ;;  %vm2819_vm0 = vmmov (!%p297_p2), 0   ;;  %v2820_v6 = vmov (!%p297_p2), 0.0  }
   0x6   : > { %300 = sbr.rel (%p297_p2) target bundleno = 1427 (0x593), region = 56  ;;  %2591 = vmatprep.subr.bf16.mxu1 (!%p297_p2), %v2818_v3  ;;  %v2592_v4 = vpack.c.bf16 (!%p297_p2), %v354_v1, %v353_v0  ;;  %v356_v5 = vld [vmem:[%s3275_s2 + $0x18] sm:$0xff] (!%p297_p2)  ;;  %2346 = vmatprep.mubr.msk.f32.mxu1 (!%p297_p2), %vm2819_vm0, %v2820_v6  ;;  %p336_p3 = scmp.lt.s32.totalorder (!%p297_p2), %s2077_s10, 1  ;;  %v357_v8 = vld [vmem:[%s3275_s2 + $0x20] sm:$0xff] (!%p297_p2)  ;;  %v358_v9 = vld [vmem:[%s3275_s2 + $0x28] sm:$0xff] (!%p297_p2)  ;;  %vm361_vm1 = vcmask (!%p297_p2), 523264  }
   0x7   : > { %v2595_v7 = vpack.c.bf16 (!%p297_p2), %v356_v5, %v355_v2  ;;  %v2598_v10 = vpack.c.bf16 (!%p297_p2), %v358_v9, %v357_v8  ;;  %v359_v11 = vld [vmem:[%s3275_s2 + $0x30] sm:$0xff] (!%p297_p2)  ;;  %v360_v12 = vld [vmem:[%s3275_s2 + $0x38] sm:$0xff] (!%p297_p2)  ;;  %v2088_v14 = vld [vmem:[%s3275_s2 + $0x40] sm:$0xff] (!%p297_p2)  ;;  %vm519_vm2 = vcmask (!%p297_p2), 64512   ;;  %vm696_vm3 = vcmask (!%p297_p2), 130048  }
   0x8   : > { %2593 = vmatpush3.bf16.msra.mxu1 (!%p297_p2), %v2592_v4  ;;  %v2601_v13 = vpack.c.bf16 (!%p297_p2), %v360_v12, %v359_v11  ;;  %v2089_v15 = vld [vmem:[%s3275_s2 + $0x48] sm:$0xff] (!%p297_p2)  ;;  %v2090_v18 = vld [vmem:[%s3275_s2 + $0x50] sm:$0xff] (!%p297_p2)  ;;  %v2091_v19 = vld [vmem:[%s3275_s2 + $0x58] sm:$0xff] (!%p297_p2) }
   0x9   : > { %2594 = vmatprep.subr.bf16.mxu1 (!%p297_p2), %v2818_v3  ;;  %v2604_v17 = vpack.c.bf16 (!%p297_p2), %v2089_v15, %v2088_v14  ;;  %v2607_v20 = vpack.c.bf16 (!%p297_p2), %v2091_v19, %v2090_v18  ;;  %v2092_v21 = vld [vmem:[%s3275_s2 + $0x60] sm:$0xff] (!%p297_p2)  ;;  %v2093_v22 = vld [vmem:[%s3275_s2 + $0x68] sm:$0xff] (!%p297_p2)  ;;  %v2094_v24 = vld [vmem:[%s3275_s2 + $0x70] sm:$0xff] (!%p297_p2) }
   0xa   : > { %v2610_v23 = vpack.c.bf16 (!%p297_p2), %v2093_v22, %v2092_v21  ;;  %v2095_v25 = vld [vmem:[%s3275_s2 + $0x78] sm:$0xff] (!%p297_p2)  ;;  %v514_v27 = vld [vmem:[%s3276_s3] sm:$0xff] (!%p297_p2)  ;;  %v2097_v28 = vld [vmem:[%s3276_s3 + $0x10] sm:$0xff] (!%p297_p2) }
   0xb   : > { %v2613_v26 = vpack.c.bf16 (!%p297_p2), %v2095_v25, %v2094_v24  ;;  %2375 = vmatprep.mubr.msk.f32.mxu0 (!%p297_p2), %vm519_vm2, %v514_v27  ;;  %v2114_v31 = vld [vmem:[%s3278_s5 + $0x40] sm:$0xff] (!%p297_p2)  ;;  %v2115_v32 = vld [vmem:[%s3278_s5 + $0x48] sm:$0xff] (!%p297_p2)  ;;  %v2116_v39 = vld [vmem:[%s3278_s5 + $0x50] sm:$0xff] (!%p297_p2) }
   0xc   : > { %2596 = vmatpush3.bf16.msra.mxu1 (!%p297_p2), %v2595_v7  ;;  %v515_v35 = vld [vmem:[%s3276_s3 + $0x8] sm:$0xff] (!%p297_p2)  ;;  %v2971_v37 = vld [vmem:[%s3277_s4] sm:$0xff] (!%p297_p2)  ;;  %v2631_v38 = vpack.c.bf16 (!%p297_p2), %v2115_v32, %v2114_v31  ;;  %v2117_v40 = vld [vmem:[%s3278_s5 + $0x58] sm:$0xff] (!%p297_p2) }
   0xd   : > { %s3284_s10 = smov (!%p336_p3, %s2077_s10), 1  ;;  %2597 = vmatprep.subr.bf16.mxu1 %v2818_v3  ;;  %v2987_v41 = vld [vmem:[%s3277_s4 + $0x8] sm:$0xff]  ;;  %v2635_v42 = vpack.c.bf16 %v2117_v40, %v2116_v39  ;;  %v2118_v43 = vld [vmem:[%s3278_s5 + $0x60] sm:$0xff]  ;;  %v2098_v47 = vld [vmem:[%s3276_s3 + $0x18] sm:$0xff] }
   0xe   : > { %s2082_s27 = sshll.u32 %s3284_s10, 3  ;;  %s2190_s13 = sshll.u32 %s3284_s10, 4  ;;  %v2119_v44 = vld [vmem:[%s3278_s5 + $0x68] sm:$0xff]  ;;  %v2120_v49 = vld [vmem:[%s3278_s5 + $0x70] sm:$0xff]  ;;  %v2121_v50 = vld [vmem:[%s3278_s5 + $0x78] sm:$0xff] }
   0xf   : > { %s339_s11 = scalar_lea.vmem %s3273_s0, %s2082_s27  ;;  %s344_s16 = scalar_lea.vmem %s3274_s1, %s2190_s13  ;;  %v2639_v45 = vpack.c.bf16 %v2119_v44, %v2118_v43  ;;  %v2643_v51 = vpack.c.bf16 %v2121_v50, %v2120_v49  ;;  %v1009_v52 = vld [vmem:[%s3278_s5] sm:$0xff]  ;;  %v1010_v53 = vld [vmem:[%s3278_s5 + $0x8] sm:$0xff]  ;;  %v1011_v62 = vld [vmem:[%s3278_s5 + $0x10] sm:$0xff] }
  0x10   : > { %2599 = vmatpush3.bf16.msra.mxu1 %v2598_v10  ;;  %v350_v16 = vld [vmem:[%s339_s11] sm:$0xff]  ;;  %v2953_v30 = vld [vmem:[%s344_s16 + $0x8] sm:$0xff]  ;;  %v2647_v54 = vpack.c.bf16 %v1010_v53, %v1009_v52  ;;  %v1012_v63 = vld [vmem:[%s3278_s5 + $0x18] sm:$0xff]  ;;  %s349_s19 = scalar_lea.vmem %s3282_s9, %s2190_s13 }
  0x11   : > { %2600 = vmatprep.subr.bf16.mxu1 %v2818_v3  ;;  %v2951_v29 = vld [vmem:[%s344_s16] sm:$0xff]  ;;  %v2651_v2 = vpack.c.bf16 %v1012_v63, %v1011_v62  ;;  %v1014_v5 = vld [vmem:[%s3278_s5 + $0x28] sm:$0xff]  ;;  %v1015_v8 = vld [vmem:[%s3278_s5 + $0x30] sm:$0xff] }
  0x12   : > { %v2963_v33 = vpack.c.bf16 %v2953_v30, %v2951_v29  ;;  %v2103_v58 = vld [vmem:[%s3281_s8] ss:$0 sm:$0xff]  ;;  %v1016_v9 = vld [vmem:[%s3278_s5 + $0x38] sm:$0xff]  ;;  %v2132_v27 = vld [vmem:[%s3278_s5 + $0xb0] sm:$0xff] }
  0x13   : > { %v1013_v4 = vld [vmem:[%s3278_s5 + $0x20] sm:$0xff]  ;;  %v3050_v10 = vld [vmem:[%s3277_s4 + $0x18] sm:$0xff]  ;;  %v2659_v11 = vpack.c.bf16 %v1016_v9, %v1015_v8  ;;  %v1286_v44 = vld [vmem:[%s3279_s6 + $0x30] sm:$0xff] }
  0x14   : > { %2602 = vmatpush3.bf16.msra.mxu1 %v2601_v13  ;;  %v2655_v7 = vpack.c.bf16 %v1014_v5, %v1013_v4  ;;  %v2126_v12 = vld [vmem:[%s3278_s5 + $0x80] sm:$0xff]  ;;  %v2127_v13 = vld [vmem:[%s3278_s5 + $0x88] sm:$0xff]  ;;  %v2129_v18 = vld [vmem:[%s3278_s5 + $0x98] sm:$0xff] }
  0x15   : > { %2603 = vmatprep.subr.bf16.mxu1 %v2818_v3  ;;  %v2663_v14 = vpack.c.bf16 %v2127_v13, %v2126_v12  ;;  %v2130_v22 = vld [vmem:[%s3278_s5 + $0xa0] sm:$0xff]  ;;  %v2140_v50 = vld [vmem:[%s3279_s6 + $0x50] sm:$0xff]  ;;  %v2151_v62 = vld [vmem:[%s3279_s6 + $0x98] sm:$0xff] }
  0x16   : > { %v1284_v40 = vld [vmem:[%s3279_s6 + $0x20] sm:$0xff]  ;;  %v2155_v4 = vld [vmem:[%s3279_s6 + $0xb8] sm:$0xff] }
  0x17   : > { %2347 = vmatmul.mubr.msk.f32.vlgmr.msra.gmra.mrb[0].mxu1 %vm361_vm1, %v350_v16  ;;  %v2142_v53 = vld [vmem:[%s3279_s6 + $0x60] sm:$0xff] }
  0x18   : > { %2605 = vmatpush3.bf16.msra.mxu1 %v2604_v17  ;;  %2365 = vmatprep.mubr.msk.f32.mxu1 %vm2819_vm0, %v2820_v6  ;;  %v3035_v6 = vld [vmem:[%s3277_s4 + $0x10] sm:$0xff] }
  0x19   : > { %2606 = vmatprep.subr.bf16.mxu1 %v2818_v3  ;;  %v2128_v17 = vld [vmem:[%s3278_s5 + $0x90] sm:$0xff] }
  0x1a   : > { %v2667_v21 = vpack.c.bf16 %v2129_v18, %v2128_v17  ;;  %v2164_v17 = vld [vmem:[%s3280_s7 + $0x40] sm:$0xff]  ;;  %v2165_v18 = vld [vmem:[%s3280_s7 + $0x48] sm:$0xff] }
  0x1c   : > { %2608 = vmatpush3.bf16.msra.mxu1 %v2607_v20 }
  0x1d   : > { %2609 = vmatprep.subr.bf16.mxu1 %v2818_v3 }
  0x20   : > { %2611 = vmatpush3.bf16.msra.mxu1 %v2610_v23  ;;  %v2131_v23 = vld [vmem:[%s3278_s5 + $0xa8] sm:$0xff] }
  0x21   : > { %2612 = vmatprep.subr.bf16.mxu1 %v2818_v3  ;;  %v2671_v25 = vpack.c.bf16 %v2131_v23, %v2130_v22  ;;  %v2168_v23 = vld [vmem:[%s3280_s7 + $0x60] sm:$0xff] }
  0x24   : > { %2614 = vmatpush3.bf16.msra.mxu1 %v2613_v26 }
  0x27   : > { %2366 = vmatmul.mubr.msk.f32.vlgmr.msra.gmra.mrb[2].mxu1 %vm361_vm1, %v350_v16 }
  0x28   : > { %2370 = vmatprep.mubr.msk.f32.mxu1 %vm519_vm2, %v2097_v28  ;;  %v2133_v28 = vld [vmem:[%s3278_s5 + $0xb8] sm:$0xff] }
  0x29   : > { %v2675_v32 = vpack.c.bf16 %v2133_v28, %v2132_v27  ;;  %v1722_v27 = vld [vmem:[%s3280_s7 + $0x8] sm:$0xff] }
  0xea   : > { %v431_v34 = vpop.f32.mrb[0].mxu1 }
  0xeb   : > { %v2348_v36 = vpop.f32.mrb[1].mxu1  ;;  %2373 = vmatprep.subr.mxu0 %v431_v34 }
  0xec   : > { %2374 = vmatpush3.msra.mxu0 %v431_v34  ;;  %v1280_v34 = vld [vmem:[%s3279_s6] sm:$0xff] }
  0xed   : > { %2376 = vmatmul.mubr.msk.f32.vlgmr.msra.gmra.mrb[0].mxu0 %vm519_vm2, %v515_v35  ;;  %2624 = vmatprep.subr.bf16.mxu0 %v2963_v33  ;;  %v1281_v35 = vld [vmem:[%s3279_s6 + $0x8] sm:$0xff] }
  0xee   : > { %2626 = vmatpush3.bf16.msra.mxu0 %v2963_v33  ;;  %2396 = vmatprep.mubr.msk.f32.mxu0 %vm696_vm3, %v2971_v37  ;;  %v2679_v36 = vpack.c.bf16 %v1281_v35, %v1280_v34  ;;  %v1725_v34 = vld [vmem:[%s3280_s7 + $0x20] sm:$0xff]  ;;  %v1726_v35 = vld [vmem:[%s3280_s7 + $0x28] sm:$0xff] }
  0xef   : > { %2632 = vmatprep.subr.bf16.mxu0 %v2631_v38 }
  0xf1   : > { %2397 = vmatmul.mubr.msk.f32.vlgmr.msra.gmra.mrb[2].mxu0 %vm696_vm3, %v2987_v41 }
  0xf2   : > { %2634 = vmatpush3.bf16.msra.mxu0 %v2631_v38  ;;  %v1283_v38 = vld [vmem:[%s3279_s6 + $0x18] sm:$0xff] }
  0xf3   : > { %2636 = vmatprep.subr.bf16.mxu0 %v2635_v42 }
  0xf6   : > { %2638 = vmatpush3.bf16.msra.mxu0 %v2635_v42  ;;  %v1285_v42 = vld [vmem:[%s3279_s6 + $0x28] sm:$0xff] }
  0xf7   : > { %2640 = vmatprep.subr.bf16.mxu0 %v2639_v45  ;;  %v2687_v43 = vpack.c.bf16 %v1285_v42, %v1284_v40  ;;  %v2176_v40 = vld [vmem:[%s3280_s7 + $0x80] sm:$0xff]  ;;  %v2177_v42 = vld [vmem:[%s3280_s7 + $0x88] sm:$0xff] }
  0xfa   : > { %v510_v46 = vpop.f32.mrb[2].mxu1  ;;  %2642 = vmatpush3.bf16.msra.mxu0 %v2639_v45  ;;  %v1287_v45 = vld [vmem:[%s3279_s6 + $0x38] sm:$0xff] }
  0xfb   : > { %v2367_v48 = vpop.f32.mrb[3].mxu1  ;;  %2368 = vmatprep.subr.mxu1 %v510_v46  ;;  %2644 = vmatprep.subr.bf16.mxu0 %v2643_v51 }
  0xfc   : > { %2369 = vmatpush3.msra.mxu1 %v510_v46  ;;  %v2691_v46 = vpack.c.bf16 %v1287_v45, %v1286_v44  ;;  %v2139_v48 = vld [vmem:[%s3279_s6 + $0x48] sm:$0xff]  ;;  %v2178_v44 = vld [vmem:[%s3280_s7 + $0x90] sm:$0xff]  ;;  %v2179_v45 = vld [vmem:[%s3280_s7 + $0x98] sm:$0xff] }
  0xfd   : > { %2371 = vmatmul.mubr.msk.f32.vlgmr.msra.gmra.mrb[4].mxu1 %vm519_vm2, %v2098_v47  ;;  %v2138_v47 = vld [vmem:[%s3279_s6 + $0x40] sm:$0xff] }
  0xfe   : > { %2382 = vmatprep.mubr.msk.f32.mxu1 %vm696_vm3, %v2971_v37  ;;  %2646 = vmatpush3.bf16.msra.mxu0 %v2643_v51  ;;  %v2695_v49 = vpack.c.bf16 %v2139_v48, %v2138_v47  ;;  %v2141_v51 = vld [vmem:[%s3279_s6 + $0x58] sm:$0xff]  ;;  %v2771_v48 = vpack.c.bf16 %v2179_v45, %v2178_v44 }
  0xff   : > { %2648 = vmatprep.subr.bf16.mxu0 %v2647_v54  ;;  %v2699_v52 = vpack.c.bf16 %v2141_v51, %v2140_v50  ;;  %v2181_v50 = vld [vmem:[%s3280_s7 + $0xa8] sm:$0xff] }
 0x1c0   : > { %v2377_v55 = vpop.f32.mrb[0].mxu0 }
 0x1c1   : > { %v673_v56 = vpop.f32.mrb[1].mxu0 }
 0x1c4   : > { %v2398_v15 = vpop.f32.mrb[2].mxu0 }
 0x1c5   : > { %v925_v16 = vpop.f32.mrb[3].mxu0 }
 0x1d0   : > { %v2372_v57 = vpop.f32.mrb[4].mxu1 }
 0x1d1   : > { %v679_v59 = vadd.f32 %v2377_v55, %v2372_v57  ;;  %v592_v60 = vpop.f32.mrb[5].mxu1  ;;  %v2145_v57 = vld [vmem:[%s3279_s6 + $0x78] sm:$0xff] }
 0x1d2   : > { %v674_v61 = vadd.f32 %v673_v56, %v592_v60  ;;  %v2144_v56 = vld [vmem:[%s3279_s6 + $0x70] sm:$0xff] }
 0x1d3   : > { %v690_v0 = vadd.f32 %v2103_v58, %v679_v59  ;;  %v2148_v59 = vld [vmem:[%s3279_s6 + $0x80] sm:$0xff] }
 0x1d4   : > { %v689_v1 = vadd.f32 %v2103_v58, %v674_v61  ;;  %v2707_v58 = vpack.c.bf16 %v2145_v57, %v2144_v56  ;;  %v2150_v61 = vld [vmem:[%s3279_s6 + $0x90] sm:$0xff]  ;;  %v2187_v57 = vld [vmem:[%s3281_s8 + $0x2] ss:$0 sm:$0xff] }
 0x1d5   : > { %v2715_v63 = vpack.c.bf16 %v2151_v62, %v2150_v61 }
 0x1d6   : > { %v2615_v3 = vpack.c.bf16 %v690_v0, %v689_v1  ;;  %2422 = vmatprep.mubr.msk.f32.mxu0 %vm361_vm1, %v689_v1  ;;  %v2153_v1 = vld [vmem:[%s3279_s6 + $0xa8] sm:$0xff] }
 0x1d7   : > { %2423 = vmatmul.mubr.msk.f32.vlgmr.msra.gmra.mrb[4].mxu0 %vm361_vm1, %v690_v0  ;;  %v2152_v0 = vld [vmem:[%s3279_s6 + $0xa0] sm:$0xff] }
 0x1d8   : > { %2616 = vmatprep.subr.bf16.mxu1 %v2615_v3  ;;  %2650 = vmatpush3.bf16.msra.mxu0 %v2647_v54  ;;  %v2143_v54 = vld [vmem:[%s3279_s6 + $0x68] sm:$0xff] }
 0x1d9   : > { %2618 = vmatpush3.bf16.msra.mxu1 %v2615_v3  ;;  %2652 = vmatprep.subr.bf16.mxu0 %v2651_v2  ;;  %v2703_v55 = vpack.c.bf16 %v2143_v54, %v2142_v53  ;;  %v2182_v54 = vld [vmem:[%s3280_s7 + $0xb0] sm:$0xff] }
 0x1da   : > { %2620 = vmatprep.subr.bf16.mxu1 %v2615_v3 }
 0x1dc   : > { %2383 = vmatmul.mubr.msk.f32.vlgmr.msra.gmra.mrb[6].mxu1 %vm696_vm3, %v2987_v41  ;;  %2654 = vmatpush3.bf16.msra.mxu0 %v2651_v2  ;;  %v2719_v2 = vpack.c.bf16 %v2153_v1, %v2152_v0 }
 0x1dd   : > { %2622 = vmatpush3.bf16.msra.mxu1 %v2615_v3  ;;  %2389 = vmatprep.mubr.msk.f32.mxu1 %vm696_vm3, %v3035_v6  ;;  %v2154_v3 = vld [vmem:[%s3279_s6 + $0xb0] sm:$0xff] }
 0x1de   : > { %2628 = vmatprep.subr.bf16.mxu1 %v2963_v33  ;;  %2656 = vmatprep.subr.bf16.mxu0 %v2655_v7  ;;  %v2723_v5 = vpack.c.bf16 %v2155_v4, %v2154_v3 }
 0x1e0   : > { %2390 = vmatmul.mubr.msk.f32.vlgmr.msra.gmra.mrb[8].mxu1 %vm696_vm3, %v3050_v10  ;;  %2658 = vmatpush3.bf16.msra.mxu0 %v2655_v7 }
 0x1e1   : > { %2630 = vmatpush3.bf16.msra.mxu1 %v2963_v33  ;;  %2403 = vmatprep.mubr.msk.f32.mxu1 %vm696_vm3, %v3035_v6 }
 0x1e2   : > { %2660 = vmatprep.subr.bf16.mxu0 %v2659_v11 }
 0x1e4   : > { %2404 = vmatmul.mubr.msk.f32.vlgmr.msra.gmra.mrb[10].mxu1 %vm696_vm3, %v3050_v10  ;;  %2662 = vmatpush3.bf16.msra.mxu0 %v2659_v11 }
 0x1e5   : > { %2524 = vmatprep.mubr.msk.f32.mxu1 %vm696_vm3, %v2971_v37  ;;  %2664 = vmatprep.subr.bf16.mxu0 %v2663_v14  ;;  %v1282_v37 = vld [vmem:[%s3279_s6 + $0x10] sm:$0xff] }
 0x1e6   : > { %v2683_v39 = vpack.c.bf16 %v1283_v38, %v1282_v37  ;;  %v1727_v37 = vld [vmem:[%s3280_s7 + $0x30] sm:$0xff]  ;;  %v1728_v38 = vld [vmem:[%s3280_s7 + $0x38] sm:$0xff] }
 0x2af   : > { %v2384_v19 = vpop.f32.mrb[6].mxu1 }
 0x2b0   : > { %v769_v20 = vpop.f32.mrb[7].mxu1 }
 0x2b1   : > { %2441 = vmatprep.mubr.msk.f32.mxu0 %vm361_vm1, %v769_v20  ;;  %v2166_v20 = vld [vmem:[%s3280_s7 + $0x50] sm:$0xff] }
 0x2b2   : > { %2442 = vmatmul.mubr.msk.f32.vlgmr.msra.gmra.mrb[4].mxu0 %vm361_vm1, %v2384_v19  ;;  %v2735_v19 = vpack.c.bf16 %v2165_v18, %v2164_v17 }
 0x2b3   : > { %2666 = vmatpush3.bf16.msra.mxu0 %v2663_v14  ;;  %v2391_v24 = vpop.f32.mrb[8].mxu1 }
 0x2b4   : > { %2668 = vmatprep.subr.bf16.mxu0 %v2667_v21  ;;  %v850_v26 = vpop.f32.mrb[9].mxu1 }
 0x2b5   : > { %2460 = vmatprep.mubr.msk.f32.mxu0 %vm361_vm1, %v850_v26 }
 0x2b7   : > { %2670 = vmatpush3.bf16.msra.mxu0 %v2667_v21  ;;  %v3089_v31 = vpop.f32.mrb[10].mxu1  ;;  %v2167_v21 = vld [vmem:[%s3280_s7 + $0x58] sm:$0xff] }
 0x2b8   : > { %2672 = vmatprep.subr.bf16.mxu0 %v2671_v25  ;;  %v1000_v33 = vpop.f32.mrb[11].mxu1  ;;  %v2739_v22 = vpack.c.bf16 %v2167_v21, %v2166_v20 }
 0x2bb   : > { %2674 = vmatpush3.bf16.msra.mxu0 %v2671_v25  ;;  %v2171_v25 = vld [vmem:[%s3280_s7 + $0x78] sm:$0xff] }
 0x2bc   : > { %2676 = vmatprep.subr.bf16.mxu0 %v2675_v32 }
 0x2bf   : > { %2678 = vmatpush3.bf16.msra.mxu0 %v2675_v32  ;;  %v1724_v32 = vld [vmem:[%s3280_s7 + $0x18] sm:$0xff] }
 0x2c0   : > { %2680 = vmatprep.subr.bf16.mxu0 %v2679_v36 }
 0x2c2   : > { %2461 = vmatmul.mubr.msk.f32.vlgmr.msra.gmra.mrb[4].mxu0 %vm361_vm1, %v2391_v24  ;;  %v2169_v24 = vld [vmem:[%s3280_s7 + $0x68] sm:$0xff] }
 0x2c3   : > { %2682 = vmatpush3.bf16.msra.mxu0 %v2679_v36  ;;  %2479 = vmatprep.mubr.msk.f32.mxu0 %vm361_vm1, %v925_v16  ;;  %v2759_v36 = vpack.c.bf16 %v1726_v35, %v1725_v34 }
 0x2c4   : > { %2684 = vmatprep.subr.bf16.mxu0 %v2683_v39 }
 0x2c7   : > { %2686 = vmatpush3.bf16.msra.mxu0 %v2683_v39  ;;  %v2763_v39 = vpack.c.bf16 %v1728_v38, %v1727_v37 }
 0x2c8   : > { %2688 = vmatprep.subr.bf16.mxu0 %v2687_v43 }
 0x2cb   : > { %2690 = vmatpush3.bf16.msra.mxu0 %v2687_v43  ;;  %v2767_v43 = vpack.c.bf16 %v2177_v42, %v2176_v40 }
 0x2cc   : > { %2692 = vmatprep.subr.bf16.mxu0 %v2691_v46 }
 0x2cf   : > { %2694 = vmatpush3.bf16.msra.mxu0 %v2691_v46 }
 0x2d0   : > { %2696 = vmatprep.subr.bf16.mxu0 %v2695_v49 }
 0x2d2   : > { %2480 = vmatmul.mubr.msk.f32.vlgmr.msra.gmra.mrb[4].mxu0 %vm361_vm1, %v2398_v15 }
 0x2d3   : > { %2698 = vmatpush3.bf16.msra.mxu0 %v2695_v49  ;;  %2498 = vmatprep.mubr.msk.f32.mxu0 %vm361_vm1, %v2951_v29  ;;  %v2149_v29 = vld [vmem:[%s3279_s6 + $0x88] sm:$0xff]  ;;  %v2180_v49 = vld [vmem:[%s3280_s7 + $0xa0] sm:$0xff] }
 0x2d4   : > { %2700 = vmatprep.subr.bf16.mxu0 %v2699_v52  ;;  %v2711_v60 = vpack.c.bf16 %v2149_v29, %v2148_v59 }
 0x2d7   : > { %2702 = vmatpush3.bf16.msra.mxu0 %v2699_v52  ;;  %v2775_v52 = vpack.c.bf16 %v2181_v50, %v2180_v49 }
 0x2d8   : > { %2704 = vmatprep.subr.bf16.mxu0 %v2703_v55 }
 0x2db   : > { %2706 = vmatpush3.bf16.msra.mxu0 %v2703_v55  ;;  %v2183_v55 = vld [vmem:[%s3280_s7 + $0xb8] sm:$0xff] }
 0x2dc   : > { %2708 = vmatprep.subr.bf16.mxu0 %v2707_v58  ;;  %v2779_v56 = vpack.c.bf16 %v2183_v55, %v2182_v54 }
 0x2df   : > { %2710 = vmatpush3.bf16.msra.mxu0 %v2707_v58 }
 0x2e0   : > { %2712 = vmatprep.subr.bf16.mxu0 %v2711_v60 }
 0x2e2   : > { %2499 = vmatmul.mubr.msk.f32.vlgmr.msra.gmra.mrb[4].mxu0 %vm361_vm1, %v2953_v30  ;;  %v2159_v30 = vld [vmem:[%s3281_s8 + $0x1] ss:$0 sm:$0xff] }
 0x2e3   : > { %2714 = vmatpush3.bf16.msra.mxu0 %v2711_v60  ;;  %2517 = vmatprep.mubr.msk.f32.mxu0 %vm361_vm1, %v1000_v33 }
 0x2e4   : > { %2716 = vmatprep.subr.bf16.mxu0 %v2715_v63 }
 0x2e7   : > { %2718 = vmatpush3.bf16.msra.mxu0 %v2715_v63 }
 0x2e8   : > { %2720 = vmatprep.subr.bf16.mxu0 %v2719_v2 }
 0x2eb   : > { %2722 = vmatpush3.bf16.msra.mxu0 %v2719_v2 }
 0x2ec   : > { %2724 = vmatprep.subr.bf16.mxu0 %v2723_v5 }
 0x2ef   : > { %2726 = vmatpush3.bf16.msra.mxu0 %v2723_v5 }
 0x2f2   : > { %2518 = vmatmul.mubr.msk.f32.vlgmr.msra.gmra.mrb[4].mxu0 %vm361_vm1, %v3089_v31  ;;  %v1723_v31 = vld [vmem:[%s3280_s7 + $0x10] sm:$0xff] }
 0x2f3   : > { %v2755_v33 = vpack.c.bf16 %v1724_v32, %v1723_v31 }
 0x3c5   : > { %v2519_v7 = vpop.f32.mrb[4].mxu0 }
 0x3c6   : > { %v1564_v8 = vadd.f32 %v2519_v7, %v2159_v30  ;;  %v1544_v9 = vpop.f32.mrb[5].mxu0 }
 0x3c7   : > { %v1563_v11 = vadd.f32 %v2159_v30, %v1544_v9 }
 0x3c8   : > { %vm1566_vm4 = vcmp.ge.f32.partialorder %v1564_v8, 0.0  ;;  %v1568_v12 = vmul.f32 0.1, %v1564_v8 }
 0x3c9   : > { %vm1565_vm5 = vcmp.ge.f32.partialorder %v1563_v11, 0.0  ;;  %v1567_v13 = vmul.f32 0.1, %v1563_v11 }
 0x3ca   : > { %v1570_v14 = vsel %vm1566_vm4, %v1564_v8, %v1568_v12 }
 0x3cb   : > { %v1569_v15 = vsel %vm1565_vm5, %v1563_v11, %v1567_v13 }
 0x3cc   : > { %v2727_v16 = vpack.c.bf16 %v1570_v14, %v1569_v15 }
 0x3ce   : > { %2728 = vmatprep.subr.bf16.mxu1 %v2727_v16 }
 0x3cf   : > { %2730 = vmatpush3.bf16.msra.mxu1 %v2727_v16 }
 0x3d0   : > { %2732 = vmatprep.subr.bf16.mxu1 %v2727_v16 }
 0x3d2   : > { %2525 = vmatmul.mubr.msk.f32.vlgmr.msra.gmra.mrb[12].mxu1 %vm696_vm3, %v2987_v41  ;;  %v2743_v41 = vpack.c.bf16 %v2169_v24, %v2168_v23 }
 0x3d3   : > { %2734 = vmatpush3.bf16.msra.mxu1 %v2727_v16  ;;  %2531 = vmatprep.mubr.msk.f32.mxu1 %vm696_vm3, %v3035_v6  ;;  %v2170_v6 = vld [vmem:[%s3280_s7 + $0x70] sm:$0xff] }
 0x3d4   : > { %2736 = vmatprep.subr.bf16.mxu1 %v2735_v19  ;;  %v2747_v26 = vpack.c.bf16 %v2171_v25, %v2170_v6 }
 0x3d6   : > { %2532 = vmatmul.mubr.msk.f32.vlgmr.msra.gmra.mrb[14].mxu1 %vm696_vm3, %v3050_v10  ;;  %v1721_v10 = vld [vmem:[%s3280_s7] sm:$0xff] }
 0x3d7   : > { %2738 = vmatpush3.bf16.msra.mxu1 %v2735_v19  ;;  %2550 = vmatprep.mubr.msk.f32.mxu1 %vm361_vm1, %v1569_v15  ;;  %v2751_v28 = vpack.c.bf16 %v1722_v27, %v1721_v10 }
 0x3d8   : > { %2740 = vmatprep.subr.bf16.mxu1 %v2739_v22 }
 0x3db   : > { %2742 = vmatpush3.bf16.msra.mxu1 %v2739_v22 }
 0x3dc   : > { %2744 = vmatprep.subr.bf16.mxu1 %v2743_v41 }
 0x3df   : > { %2746 = vmatpush3.bf16.msra.mxu1 %v2743_v41 }
 0x3e0   : > { %2748 = vmatprep.subr.bf16.mxu1 %v2747_v26 }
 0x3e3   : > { %2750 = vmatpush3.bf16.msra.mxu1 %v2747_v26 }
 0x3e4   : > { %2752 = vmatprep.subr.bf16.mxu1 %v2751_v28 }
 0x3e6   : > { %2551 = vmatmul.mubr.msk.f32.vlgmr.msra.gmra.mrb[16].mxu1 %vm361_vm1, %v1570_v14 }
 0x3e7   : > { %2754 = vmatpush3.bf16.msra.mxu1 %v2751_v28 }
 0x3e8   : > { %2756 = vmatprep.subr.bf16.mxu1 %v2755_v33 }
 0x3eb   : > { %2758 = vmatpush3.bf16.msra.mxu1 %v2755_v33 }
 0x3ec   : > { %2760 = vmatprep.subr.bf16.mxu1 %v2759_v36 }
 0x3ef   : > { %2762 = vmatpush3.bf16.msra.mxu1 %v2759_v36 }
 0x3f0   : > { %2764 = vmatprep.subr.bf16.mxu1 %v2763_v39 }
 0x3f3   : > { %2766 = vmatpush3.bf16.msra.mxu1 %v2763_v39 }
 0x3f4   : > { %2768 = vmatprep.subr.bf16.mxu1 %v2767_v43 }
 0x4a5   : > { %v2526_v46 = vpop.f32.mrb[12].mxu1 }
 0x4a6   : > { %v1637_v47 = vpop.f32.mrb[13].mxu1 }
 0x4a7   : > { %2569 = vmatprep.mubr.msk.f32.mxu1 %vm361_vm1, %v1637_v47 }
 0x4a8   : > { %2570 = vmatmul.mubr.msk.f32.vlgmr.msra.gmra.mrb[16].mxu1 %vm361_vm1, %v2526_v46 }
 0x4a9   : > { %2770 = vmatpush3.bf16.msra.mxu1 %v2767_v43  ;;  %v2533_v51 = vpop.f32.mrb[14].mxu1 }
 0x4aa   : > { %2772 = vmatprep.subr.bf16.mxu1 %v2771_v48  ;;  %v1712_v53 = vpop.f32.mrb[15].mxu1 }
 0x4ab   : > { %2588 = vmatprep.mubr.msk.f32.mxu1 %vm361_vm1, %v1712_v53 }
 0x4ad   : > { %2774 = vmatpush3.bf16.msra.mxu1 %v2771_v48 }
 0x4ae   : > { %2776 = vmatprep.subr.bf16.mxu1 %v2775_v52 }
 0x4b1   : > { %2778 = vmatpush3.bf16.msra.mxu1 %v2775_v52 }
 0x4b2   : > { %2780 = vmatprep.subr.bf16.mxu1 %v2779_v56 }
 0x4b5   : > { %2782 = vmatpush3.bf16.msra.mxu1 %v2779_v56 }
 0x4b8   : > { %2589 = vmatmul.mubr.msk.f32.vlgmr.msra.gmra.mrb[16].mxu1 %vm361_vm1, %v2533_v51 }
 0x58b   : > { %v2590_v58 = vpop.f32.mrb[16].mxu1 }
 0x58c   : > { %v2001_v59 = vadd.f32 %v2590_v58, %v2187_v57  ;;  %v1981_v29 = vpop.f32.mrb[17].mxu1 }
 0x58d   : > { %v2000_v60 = vadd.f32 %v2187_v57, %v1981_v29 }
 0x58e   : > { %vm2003_vm6 = vcmp.ge.f32.partialorder %v2001_v59, 0.0  ;;  %v2005_v61 = vmul.f32 0.1, %v2001_v59 }
 0x58f   : > { %vm2002_vm7 = vcmp.ge.f32.partialorder %v2000_v60, 0.0  ;;  %v2004_v62 = vmul.f32 0.1, %v2000_v60 }
 0x590   : > { %v2007_v63 = vsel %vm2003_vm6, %v2001_v59, %v2005_v61 }
 0x591   : > { %2009 = vst.msk [vmem:[%s349_s19 + $0x8] sm:$0xff] %vm361_vm1, %v2007_v63  ;;  %v2006_v0 = vsel %vm2002_vm7, %v2000_v60, %v2004_v62 }
 0x592   : > { %2008 = vst.msk [vmem:[%s349_s19] sm:$0xff] %vm361_vm1, %v2006_v0 }
 0x593 PF: > { %s19_s30 = sadd.s32 1, %s2816_s30  }
 0x594   : > { %p16_p4 = scmp.ge.s32.totalorder %s19_s30, 4  }
 0x596   :  { %18 = sbr.rel (!%p16_p4) target bundleno = 1 (0x1), region = 100 }

</bundles_post_ra>
